<compile_context>
chip_gen: v7x
topology: tpu7x:2x2x1
jax: 0.10.0
libtpu: 0.0.40
codegen_flags: <defaults>
</compile_context>

<pallas_src>
import functools

import jax
import jax.numpy as jnp
import numpy as np
from jax.experimental import pallas as pl
from jax.experimental.pallas import tpu as pltpu


def _round_up(v, m):
    return -(-v // m) * m


def _choose_bt(batch, n, target_rows):
    """Graphs per grid chunk: fill the MXU (bt*N ~= target_rows) but keep at
    least 2 chunks when B >= 2 so v7x's second TensorCore is used."""
    bt_fill = max(1, target_rows // n) if n <= 64 else 1   # block-diag grows as (bt*N)^2
    if batch >= 2 * bt_fill:
        return bt_fill
    if batch >= 2:
        return -(-batch // 2)          # exactly 2 chunks
    return 1


def _tagconv_chunk_kernel(a_ref, x_ref, perm_ref,
                          w1_ref, b1_ref, w2_ref, b2_ref, wc_ref, bc_ref,
                          out_ref, *, bt, n, use_a2, compute_dtype):
    f32 = jnp.float32
    cdt = compute_dtype
    m = bt * n

    A = a_ref[0].astype(cdt)           # (M, M) block-diagonal normalized adjacency
    X0 = x_ref[0]                      # (M, Fin) f32 node features

    if use_a2:
        # Stacked hops: [A; A^2] @ X gives both hops in one MXU push, removing
        # the serial hop dependency and the intermediate recast of X1 / Y1.
        A2 = jnp.dot(A, A, preferred_element_type=f32).astype(cdt)
        AA = jnp.concatenate([A, A2], axis=0)                       # (2M, M)
        hops1 = jnp.dot(AA, X0.astype(cdt), preferred_element_type=f32)
        X1, X2 = hops1[:m], hops1[m:]
    else:
        X1 = jnp.dot(A, X0.astype(cdt), preferred_element_type=f32)
        X2 = jnp.dot(A, X1.astype(cdt), preferred_element_type=f32)

    # ---- TAGConv 1: fused "concat + Linear" as one wide-K matmul, then ReLU ----
    cat1 = jnp.concatenate([X0, X1, X2], axis=-1)                   # (M, 3*Fin)
    H1 = jnp.dot(cat1.astype(cdt), w1_ref[...].astype(cdt),
                 preferred_element_type=f32) + b1_ref[...]
    H1 = jnp.maximum(H1, 0.0)                                       # (M, Hp)

    # ---- TAGConv 2 -------------------------------------------------------------
    if use_a2:
        hops2 = jnp.dot(AA, H1.astype(cdt), preferred_element_type=f32)
        Y1, Y2 = hops2[:m], hops2[m:]
    else:
        Y1 = jnp.dot(A, H1.astype(cdt), preferred_element_type=f32)
        Y2 = jnp.dot(A, Y1.astype(cdt), preferred_element_type=f32)

    cat2 = jnp.concatenate([H1, Y1, Y2], axis=-1)                   # (M, 3*Hp), 128-aligned
    H2 = jnp.dot(cat2.astype(cdt), w2_ref[...].astype(cdt),
                 preferred_element_type=f32) + b2_ref[...]          # (M, Hp)

    # ---- dgl.mean_nodes: per-graph sublane reduce on the XLU (no pool matrix) --
    # TODO(synk): uses the fixed padded node count N per graph (matches the dense
    # padded reference); true per-graph node counts would need a count input.
    hg = jnp.sum(H2.reshape(bt, n, -1), axis=1) * (1.0 / n)         # (bt, Hp)

    # ---- classifier on concat([hg, perm]); weights padded to 128 output lanes --
    combined = jnp.concatenate([hg, perm_ref[0]], axis=-1)          # (bt, Hp + P)
    out_ref[0] = (jnp.dot(combined.astype(cdt), wc_ref[...].astype(cdt),
                          preferred_element_type=f32) + bc_ref[...])


def tagconv_model_forward(a_hat, x, perm, params, *,
                          target_rows=256,
                          compute_dtype=jnp.float32,
                          a_dtype=jnp.float32):
    """a_hat: (B,N,N) normalized adjacency, x: (B,N,Fin), perm: (B,P).
    Returns f32 logits (B, C).  On v6e/v7x pass compute_dtype=a_dtype=bfloat16."""
    B, N, _ = a_hat.shape
    fin = x.shape[-1]
    w1, b1, w2, b2, wc, bc = (params["w1"], params["b1"], params["w2"],
                              params["b2"], params["wc"], params["bc"])
    hid = w1.shape[1]
    perm_len = perm.shape[-1]
    num_classes = wc.shape[1]

    # ---- chunking --------------------------------------------------------------
    bt = _choose_bt(B, N, target_rows)
    b_pad = _round_up(B, bt)
    nc = b_pad // bt
    m = bt * N
    if b_pad != B:
        pad = b_pad - B
        a_hat = jnp.pad(a_hat, ((0, pad), (0, 0), (0, 0)))
        x = jnp.pad(x, ((0, pad), (0, 0), (0, 0)))
        perm = jnp.pad(perm, ((0, pad), (0, 0)))

    # ---- block-diagonal adjacency per chunk (plain reshape when bt == 1) -------
    a4 = a_hat.reshape(nc, bt, N, N).astype(jnp.float32)
    eye = jnp.eye(bt, dtype=jnp.float32)
    a_blk = jnp.einsum("cbuv,bd->cbudv", a4, eye).reshape(nc, m, m).astype(a_dtype)

    x3 = x.reshape(nc, m, fin).astype(jnp.float32)
    perm3 = perm.reshape(nc, bt, perm_len).astype(jnp.float32)

    # ---- lane padding: hidden and class dims to 128 lanes ----------------------
    hid_pad = _round_up(hid, 128)
    c_pad = _round_up(num_classes, 128)

    w1p = jnp.zeros((3 * fin, hid_pad), jnp.float32).at[:, :hid].set(w1)
    b1p = jnp.zeros((1, hid_pad), jnp.float32).at[0, :hid].set(b1)
    w2p = jnp.zeros((3 * hid_pad, hid_pad), jnp.float32)
    for j in range(3):
        w2p = w2p.at[j * hid_pad:j * hid_pad + hid, :hid].set(w2[j * hid:(j + 1) * hid])
    b2p = jnp.zeros((1, hid_pad), jnp.float32).at[0, :hid].set(b2)
    wcp = jnp.zeros((hid_pad + perm_len, c_pad), jnp.float32)
    wcp = wcp.at[:hid, :num_classes].set(wc[:hid])
    wcp = wcp.at[hid_pad:hid_pad + perm_len, :num_classes].set(wc[hid:])
    bcp = jnp.zeros((1, c_pad), jnp.float32).at[0, :num_classes].set(bc)

    # A^2 costs O(M^3) per chunk; only worth it when N is small vs. feature dims.
    use_a2 = N <= 4 * max(fin, hid)

    kernel = functools.partial(_tagconv_chunk_kernel, bt=bt, n=N,
                               use_a2=use_a2, compute_dtype=compute_dtype)

    # ---- VMEM budget (v5e scoped default 16 MiB, v7x 64 MiB physical) ----------
    a_bytes = m * m * jnp.dtype(a_dtype).itemsize
    x_bytes = m * fin * 4
    adj_work = (3 if use_a2 else 1) * m * m * 4          # A cast + A2 + stacked AA
    act_bytes = m * (3 * fin + 8 * hid_pad) * 4          # hops / cats / H1 / H2
    vmem_needed = 2 * (a_bytes + x_bytes) + adj_work + act_bytes + (2 << 20)
    vmem_limit = int(min(48 << 20, max(32 << 20, vmem_needed)))
    # TODO(synk): for N >= ~1-2K the (M, M) adjacency exceeds this budget; the hop
    # matmuls would need a node-tile (K-tiled) grid axis with an f32 accumulator.

    out = pl.pallas_call(
        kernel,
        out_shape=jax.ShapeDtypeStruct((nc, bt, c_pad), jnp.float32),
        grid_spec=pltpu.PrefetchScalarGridSpec(
            num_scalar_prefetch=0,
            grid=(nc,),
            in_specs=[
                pl.BlockSpec((1, m, m), lambda i: (i, 0, 0)),              # a_blk
                pl.BlockSpec((1, m, fin), lambda i: (i, 0, 0)),            # x
                pl.BlockSpec((1, bt, perm_len), lambda i: (i, 0, 0)),      # perm
                pl.BlockSpec((3 * fin, hid_pad), lambda i: (0, 0)),        # w1 (padded)
                pl.BlockSpec((1, hid_pad), lambda i: (0, 0)),              # b1
                pl.BlockSpec((3 * hid_pad, hid_pad), lambda i: (0, 0)),    # w2 (padded)
                pl.BlockSpec((1, hid_pad), lambda i: (0, 0)),              # b2
                pl.BlockSpec((hid_pad + perm_len, c_pad), lambda i: (0, 0)),  # wc
                pl.BlockSpec((1, c_pad), lambda i: (0, 0)),                # bc
            ],
            out_specs=pl.BlockSpec((1, bt, c_pad), lambda i: (i, 0, 0)),
        ),
        compiler_params=pltpu.CompilerParams(
            dimension_semantics=("parallel",),
            vmem_limit_bytes=vmem_limit),
    )(a_blk, x3, perm3, w1p, b1p, w2p, b2p, wcp, bcp)

    return out.reshape(b_pad, c_pad)[:B, :num_classes]


def reference_forward(a_hat, x, perm, params):
    """Plain-JAX reference of the same forward, for correctness checking."""
    def tagconv(A, X, W, b):
        X1 = jnp.einsum("bvu,buf->bvf", A, X)
        X2 = jnp.einsum("bvu,buf->bvf", A, X1)
        cat = jnp.concatenate([X, X1, X2], axis=-1)
        return jnp.einsum("bnf,fo->bno", cat, W) + b

    h = jax.nn.relu(tagconv(a_hat, x, params["w1"], params["b1"]))
    h = tagconv(a_hat, h, params["w2"], params["b2"])
    hg = jnp.mean(h, axis=1)                                  # (B, H)
    combined = jnp.concatenate([hg, perm], axis=1)
    return combined @ params["wc"] + params["bc"]


def normalize_adjacency(adj):
    """DGL TAGConv symmetric normalization: D^{-1/2} A D^{-1/2} (deg >= 1)."""
    in_deg = jnp.clip(jnp.sum(adj, axis=-1), 1.0, None)       # (B, N)
    norm = jax.lax.rsqrt(in_deg)
    return adj * norm[:, :, None] * norm[:, None, :]


if __name__ == "__main__":
    # Small shapes consistent with the module's forward.
    B, N = 2, 16            # 2 graphs, 16 nodes each
    INPUT_DIM = 8
    HIDDEN_DIM = 32
    PERM_LEN = 8
    NUM_CLASSES = 4

    key = jax.random.PRNGKey(0)
    ks = jax.random.split(key, 10)

    # Deterministic synthetic graph (dense 0/1 adjacency, no self loops).
    adj = (jax.random.uniform(ks[0], (B, N, N)) < 0.25).astype(jnp.float32)
    adj = adj * (1.0 - jnp.eye(N, dtype=jnp.float32)[None])
    a_hat = normalize_adjacency(adj)

    x = jax.random.normal(ks[1], (B, N, INPUT_DIM), dtype=jnp.float32)
    perm = jax.random.normal(ks[2], (B, PERM_LEN), dtype=jnp.float32)

    # Deterministic parameter init (shapes from TAGConv(k=2) + Linear).
    params = {
        "w1": 0.1 * jax.random.normal(ks[3], (3 * INPUT_DIM, HIDDEN_DIM), jnp.float32),
        "b1": 0.1 * jax.random.normal(ks[4], (HIDDEN_DIM,), jnp.float32),
        "w2": 0.1 * jax.random.normal(ks[5], (3 * HIDDEN_DIM, HIDDEN_DIM), jnp.float32),
        "b2": 0.1 * jax.random.normal(ks[6], (HIDDEN_DIM,), jnp.float32),
        "wc": 0.1 * jax.random.normal(ks[7], (HIDDEN_DIM + PERM_LEN, NUM_CLASSES), jnp.float32),
        "bc": 0.1 * jax.random.normal(ks[8], (NUM_CLASSES,), jnp.float32),
    }

    # Exact (f32) path: check against the plain-JAX reference.
    out = tagconv_model_forward(a_hat, x, perm, params)
    out = jax.block_until_ready(out)
    ref = reference_forward(a_hat, x, perm, params)
    assert out.shape == (B, NUM_CLASSES)
    np.testing.assert_allclose(np.asarray(out), np.asarray(ref), rtol=1e-4, atol=1e-4)

    # Bandwidth-optimized path (bf16 adjacency + bf16 MXU math, f32 accumulation):
    # exercise compilation/run only (lower precision by construction).
    out_bf16 = tagconv_model_forward(a_hat, x, perm, params,
                                     compute_dtype=jnp.bfloat16,
                                     a_dtype=jnp.bfloat16)
    out_bf16 = jax.block_until_ready(out_bf16)
    assert out_bf16.shape == (B, NUM_CLASSES)
    assert bool(jnp.all(jnp.isfinite(out_bf16)))

    print("KERNEL_OK")
</pallas_src>

<mosaic_0001>
module attributes {stable_mosaic.version = 11 : i64} {
  func.func @_tagconv_chunk_kernel(%arg0: i32, %arg1: memref<1x16x16xf32, #tpu.memory_space<vmem>>, %arg2: memref<1x16x8xf32, #tpu.memory_space<vmem>>, %arg3: memref<1x1x8xf32, #tpu.memory_space<vmem>>, %arg4: memref<24x128xf32, #tpu.memory_space<vmem>>, %arg5: memref<1x128xf32, #tpu.memory_space<vmem>>, %arg6: memref<384x128xf32, #tpu.memory_space<vmem>>, %arg7: memref<1x128xf32, #tpu.memory_space<vmem>>, %arg8: memref<136x128xf32, #tpu.memory_space<vmem>>, %arg9: memref<1x128xf32, #tpu.memory_space<vmem>>, %arg10: memref<1x1x128xf32, #tpu.memory_space<vmem>>) attributes {dimension_semantics = [#tpu.dimension_semantics<parallel>], iteration_bounds = array<i64: 2>, scalar_prefetch = 0 : i64, scratch_operands = 0 : i64, tpu.core_type = #tpu.core_type<tc>, window_params = [{transform_indices = @transform_0, window_bounds = array<i64: 1, 16, 16>}, {transform_indices = @transform_1, window_bounds = array<i64: 1, 16, 8>}, {transform_indices = @transform_2, window_bounds = array<i64: 1, 1, 8>}, {pipeline_mode = #tpu.pipeline_mode<synchronous>, transform_indices = @transform_3, window_bounds = array<i64: 24, 128>}, {pipeline_mode = #tpu.pipeline_mode<synchronous>, transform_indices = @transform_4, window_bounds = array<i64: 1, 128>}, {pipeline_mode = #tpu.pipeline_mode<synchronous>, transform_indices = @transform_5, window_bounds = array<i64: 384, 128>}, {pipeline_mode = #tpu.pipeline_mode<synchronous>, transform_indices = @transform_6, window_bounds = array<i64: 1, 128>}, {pipeline_mode = #tpu.pipeline_mode<synchronous>, transform_indices = @transform_7, window_bounds = array<i64: 136, 128>}, {pipeline_mode = #tpu.pipeline_mode<synchronous>, transform_indices = @transform_8, window_bounds = array<i64: 1, 128>}, {transform_indices = @transform_9, window_bounds = array<i64: 1, 1, 128>}]} {
    %c0 = arith.constant 0 : index
    %c0_0 = arith.constant 0 : index
    %c0_1 = arith.constant 0 : index
    %0 = vector.load %arg1[%c0, %c0_0, %c0_1] : memref<1x16x16xf32, #tpu.memory_space<vmem>>, vector<1x16x16xf32>
    %1 = vector.shape_cast %0 : vector<1x16x16xf32> to vector<16x16xf32>
    %c0_2 = arith.constant 0 : index
    %c0_3 = arith.constant 0 : index
    %c0_4 = arith.constant 0 : index
    %2 = vector.load %arg2[%c0_2, %c0_3, %c0_4] : memref<1x16x8xf32, #tpu.memory_space<vmem>>, vector<1x16x8xf32>
    %3 = vector.shape_cast %2 : vector<1x16x8xf32> to vector<16x8xf32>
    %cst = arith.constant dense<0.000000e+00> : vector<16x16xf32>
    %4 = tpu.matmul %1, %1, %cst {dimension_numbers = #tpu.dot_dimension_numbers<[1], [0], [0], [1], [0, 0, 1, 1], [], []>} : vector<16x16xf32>, vector<16x16xf32>, vector<16x16xf32> -> vector<16x16xf32>
    %5 = tpu.concatenate %1, %4 in 0 : vector<16x16xf32>, vector<16x16xf32> -> vector<32x16xf32>
    %cst_5 = arith.constant dense<0.000000e+00> : vector<32x8xf32>
    %6 = tpu.matmul %5, %3, %cst_5 {dimension_numbers = #tpu.dot_dimension_numbers<[1], [0], [0], [1], [0, 0, 1, 1], [], []>} : vector<32x16xf32>, vector<16x8xf32>, vector<32x8xf32> -> vector<32x8xf32>
    %7 = vector.extract_strided_slice %6 {offsets = [0, 0], sizes = [16, 8], strides = [1, 1]} : vector<32x8xf32> to vector<16x8xf32>
    %8 = vector.extract_strided_slice %6 {offsets = [16, 0], sizes = [16, 8], strides = [1, 1]} : vector<32x8xf32> to vector<16x8xf32>
    %9 = tpu.concatenate %3, %7, %8 in 1 : vector<16x8xf32>, vector<16x8xf32>, vector<16x8xf32> -> vector<16x24xf32>
    %c0_6 = arith.constant 0 : index
    %c0_7 = arith.constant 0 : index
    %10 = vector.load %arg4[%c0_6, %c0_7] : memref<24x128xf32, #tpu.memory_space<vmem>>, vector<24x128xf32>
    %cst_8 = arith.constant dense<0.000000e+00> : vector<16x128xf32>
    %11 = tpu.matmul %9, %10, %cst_8 {dimension_numbers = #tpu.dot_dimension_numbers<[1], [0], [0], [1], [0, 0, 1, 1], [], []>} : vector<16x24xf32>, vector<24x128xf32>, vector<16x128xf32> -> vector<16x128xf32>
    %c0_9 = arith.constant 0 : index
    %c0_10 = arith.constant 0 : index
    %12 = vector.load %arg5[%c0_9, %c0_10] : memref<1x128xf32, #tpu.memory_space<vmem>>, vector<1x128xf32>
    %13 = vector.broadcast %12 : vector<1x128xf32> to vector<16x128xf32>
    %14 = arith.addf %11, %13 : vector<16x128xf32>
    %cst_11 = arith.constant 0.000000e+00 : f32
    %15 = vector.broadcast %cst_11 : f32 to vector<16x128xf32>
    %16 = arith.maximumf %14, %15 : vector<16x128xf32>
    %cst_12 = arith.constant dense<0.000000e+00> : vector<32x128xf32>
    %17 = tpu.matmul %5, %16, %cst_12 {dimension_numbers = #tpu.dot_dimension_numbers<[1], [0], [0], [1], [0, 0, 1, 1], [], []>} : vector<32x16xf32>, vector<16x128xf32>, vector<32x128xf32> -> vector<32x128xf32>
    %18 = vector.extract_strided_slice %17 {offsets = [0, 0], sizes = [16, 128], strides = [1, 1]} : vector<32x128xf32> to vector<16x128xf32>
    %19 = vector.extract_strided_slice %17 {offsets = [16, 0], sizes = [16, 128], strides = [1, 1]} : vector<32x128xf32> to vector<16x128xf32>
    %20 = tpu.concatenate %16, %18, %19 in 1 : vector<16x128xf32>, vector<16x128xf32>, vector<16x128xf32> -> vector<16x384xf32>
    %c0_13 = arith.constant 0 : index
    %c0_14 = arith.constant 0 : index
    %21 = vector.load %arg6[%c0_13, %c0_14] : memref<384x128xf32, #tpu.memory_space<vmem>>, vector<384x128xf32>
    %cst_15 = arith.constant dense<0.000000e+00> : vector<16x128xf32>
    %22 = tpu.matmul %20, %21, %cst_15 {dimension_numbers = #tpu.dot_dimension_numbers<[1], [0], [0], [1], [0, 0, 1, 1], [], []>} : vector<16x384xf32>, vector<384x128xf32>, vector<16x128xf32> -> vector<16x128xf32>
    %c0_16 = arith.constant 0 : index
    %c0_17 = arith.constant 0 : index
    %23 = vector.load %arg7[%c0_16, %c0_17] : memref<1x128xf32, #tpu.memory_space<vmem>>, vector<1x128xf32>
    %24 = vector.broadcast %23 : vector<1x128xf32> to vector<16x128xf32>
    %25 = arith.addf %22, %24 : vector<16x128xf32>
    %26 = vector.shape_cast %25 : vector<16x128xf32> to vector<1x16x128xf32>
    %cst_18 = arith.constant dense<0.000000e+00> : vector<1x128xf32>
    %27 = vector.multi_reduction <add>, %26, %cst_18 [1] : vector<1x16x128xf32> to vector<1x128xf32>
    %cst_19 = arith.constant 6.250000e-02 : f32
    %28 = vector.broadcast %cst_19 : f32 to vector<1x128xf32>
    %29 = arith.mulf %27, %28 : vector<1x128xf32>
    %c0_20 = arith.constant 0 : index
    %c0_21 = arith.constant 0 : index
    %c0_22 = arith.constant 0 : index
    %30 = vector.load %arg3[%c0_20, %c0_21, %c0_22] : memref<1x1x8xf32, #tpu.memory_space<vmem>>, vector<1x1x8xf32>
    %31 = vector.shape_cast %30 : vector<1x1x8xf32> to vector<1x8xf32>
    %32 = tpu.concatenate %29, %31 in 1 : vector<1x128xf32>, vector<1x8xf32> -> vector<1x136xf32>
    %c0_23 = arith.constant 0 : index
    %c0_24 = arith.constant 0 : index
    %33 = vector.load %arg8[%c0_23, %c0_24] : memref<136x128xf32, #tpu.memory_space<vmem>>, vector<136x128xf32>
    %cst_25 = arith.constant dense<0.000000e+00> : vector<1x128xf32>
    %34 = tpu.matmul %32, %33, %cst_25 {dimension_numbers = #tpu.dot_dimension_numbers<[1], [0], [0], [1], [0, 0, 1, 1], [], []>} : vector<1x136xf32>, vector<136x128xf32>, vector<1x128xf32> -> vector<1x128xf32>
    %c0_26 = arith.constant 0 : index
    %c0_27 = arith.constant 0 : index
    %35 = vector.load %arg9[%c0_26, %c0_27] : memref<1x128xf32, #tpu.memory_space<vmem>>, vector<1x128xf32>
    %36 = arith.addf %34, %35 : vector<1x128xf32>
    %c0_28 = arith.constant 0 : index
    %c0_29 = arith.constant 0 : index
    %c0_30 = arith.constant 0 : index
    %37 = vector.load %arg10[%c0_28, %c0_29, %c0_30] : memref<1x1x128xf32, #tpu.memory_space<vmem>>, vector<1x1x128xf32>
    %38 = vector.shape_cast %37 : vector<1x1x128xf32> to vector<1x128xf32>
    %39 = vector.shape_cast %36 : vector<1x128xf32> to vector<1x1x128xf32>
    tpu.vector_store %arg10[%c0_28, %c0_29, %c0_30], %39 {strides = array<i32>} : memref<1x1x128xf32, #tpu.memory_space<vmem>>, vector<1x1x128xf32>,
    return
  }
  func.func @transform_0(%arg0: i32) -> (i32, i32, i32) {
    %c0_i32 = arith.constant 0 : i32
    %c0_i32_0 = arith.constant 0 : i32
    %c0_i32_1 = arith.constant 0 : i32
    return %arg0, %c0_i32, %c0_i32_0 : i32, i32, i32
  }
  func.func @transform_1(%arg0: i32) -> (i32, i32, i32) {
    %c0_i32 = arith.constant 0 : i32
    %c0_i32_0 = arith.constant 0 : i32
    %c0_i32_1 = arith.constant 0 : i32
    return %arg0, %c0_i32, %c0_i32_0 : i32, i32, i32
  }
  func.func @transform_2(%arg0: i32) -> (i32, i32, i32) {
    %c0_i32 = arith.constant 0 : i32
    %c0_i32_0 = arith.constant 0 : i32
    %c0_i32_1 = arith.constant 0 : i32
    return %arg0, %c0_i32, %c0_i32_0 : i32, i32, i32
  }
  func.func @transform_3(%arg0: i32) -> (i32, i32) {
    %c0_i32 = arith.constant 0 : i32
    %c0_i32_0 = arith.constant 0 : i32
    %c0_i32_1 = arith.constant 0 : i32
    return %c0_i32, %c0_i32_0 : i32, i32
  }
  func.func @transform_4(%arg0: i32) -> (i32, i32) {
    %c0_i32 = arith.constant 0 : i32
    %c0_i32_0 = arith.constant 0 : i32
    %c0_i32_1 = arith.constant 0 : i32
    return %c0_i32, %c0_i32_0 : i32, i32
  }
  func.func @transform_5(%arg0: i32) -> (i32, i32) {
    %c0_i32 = arith.constant 0 : i32
    %c0_i32_0 = arith.constant 0 : i32
    %c0_i32_1 = arith.constant 0 : i32
    return %c0_i32, %c0_i32_0 : i32, i32
  }
  func.func @transform_6(%arg0: i32) -> (i32, i32) {
    %c0_i32 = arith.constant 0 : i32
    %c0_i32_0 = arith.constant 0 : i32
    %c0_i32_1 = arith.constant 0 : i32
    return %c0_i32, %c0_i32_0 : i32, i32
  }
  func.func @transform_7(%arg0: i32) -> (i32, i32) {
    %c0_i32 = arith.constant 0 : i32
    %c0_i32_0 = arith.constant 0 : i32
    %c0_i32_1 = arith.constant 0 : i32
    return %c0_i32, %c0_i32_0 : i32, i32
  }
  func.func @transform_8(%arg0: i32) -> (i32, i32) {
    %c0_i32 = arith.constant 0 : i32
    %c0_i32_0 = arith.constant 0 : i32
    %c0_i32_1 = arith.constant 0 : i32
    return %c0_i32, %c0_i32_0 : i32, i32
  }
  func.func @transform_9(%arg0: i32) -> (i32, i32, i32) {
    %c0_i32 = arith.constant 0 : i32
    %c0_i32_0 = arith.constant 0 : i32
    %c0_i32_1 = arith.constant 0 : i32
    return %arg0, %c0_i32, %c0_i32_0 : i32, i32, i32
  }
}

</mosaic_0001>

<bundles_post_ra>
// kernel: tpu_custom_call.1
= control target key start
LH: loop header
LB: loop body
LE: loop exit
PB: predicated region body
PF: predicated region fallthrough
CT: control target
= control target key end

     0   :  { %14 = vsyncpa [#allocation3], 0  ;;  %s1964_s0 = inlined_call_operand.vmem [shape: f32[2,16,16], index: 0, kind: input, shape index: {}]   ;;  %s1965_s1 = inlined_call_operand.vmem [shape: f32[2,16,8], index: 1, kind: input, shape index: {}]   ;;  %s1966_s2 = inlined_call_operand.vmem [shape: f32[2,1,8], index: 2, kind: input, shape index: {}]   ;;  %s1967_s3 = inlined_call_operand.vmem [shape: f32[24,128], index: 3, kind: input, shape index: {}]   ;;  %s1968_s4 = inlined_call_operand.vmem [shape: f32[1,128], index: 4, kind: input, shape index: {}]   ;;  %s1969_s5 = inlined_call_operand.hbm [shape: f32[384,128], index: 5, kind: input, shape index: {}]   ;;  %s1970_s6 = inlined_call_operand.vmem [shape: f32[1,128], index: 6, kind: input, shape index: {}]   ;;  %s1971_s7 = inlined_call_operand.hbm [shape: f32[136,128], index: 7, kind: input, shape index: {}]   ;;  %s1972_s8 = inlined_call_operand.vmem [shape: f32[1,128], index: 8, kind: input, shape index: {}]   ;;  %s1973_s9 = inlined_call_operand.hbm [shape: f32[2,1,128], index: 9, kind: output, shape index: {}]  }
   0x1   :  { %15 = vsyncpa [#allocation6], 0 }
   0x2   :  { %16 = vsyncpa [#allocation4], 0 }
   0x3   :  { %18 = vsyncpa [#allocation4 + $0x1], 0  ;;  %s1725_s30 = smov 0   ;;  %s1727_s10 = smov 0  }
   0x4   :  { %s1729_s11 = smov 0   ;;  %s1731_s12 = smov 0  }
   0x5 LB: > { %1980 = sst [smem:[#allocation11_spill]] %s1660_s11  ;;  %s1746_s13 = sadd.s32 4294967295, %s1664_s12   ;;  %s1664_s12 = sphi %s1731_s12, %s1994_s12   ;;  %s1660_s11 = sphi %s1729_s11, %s1996_s11   ;;  %s1656_s10 = sphi %s1727_s10, %s1998_s10   ;;  %s1652_s30 = sphi %s1725_s30, %s1997_s30  }
   0x6   : > { %s1188_s14 = sadd.s32 4294967294, %s1664_s12   ;;  %s1750_s15 = sadd.s32 1, %s1664_s12  }
   0x7   : > { %1981 = sst [smem:[#allocation12_spill]] %s1750_s15  ;;  %s235_s16 = sadd.s32 1, %s1660_s11 }
   0x8   : > { %s232_s17 = ssub.s32 %s1664_s12, %s1750_s15  ;;  %p245_p0 = scmp.ne.s32.totalorder %s1660_s11, %s1656_s10 }
   0x9   : > { %p233_p1 = scmp.eq.s32.totalorder %s232_s17, 0  ;;  %p246_p2 = scmp.eq.s32.totalorder %s1746_s13, 1 }
   0xa   : > { %p251_p3 = scmp.ne.s32.totalorder %s1656_s10, %s1652_s30  ;;  %p252_p4 = scmp.eq.s32.totalorder %s1188_s14, 1 }
   0xb   : > { %s1761_s18 = scalar_select %p233_p1, %s1660_s11, %s235_s16  }
   0xc   : > { %p1763_p5 = por %p246_p2, %p245_p0  ;;  %p1767_p6 = por %p252_p4, %p251_p3 }
   0xd   : > { %1982 = sst [smem:[#allocation13_spill]] %s1761_s18  ;;  %p1189_p7 = scmp.ge.s32.totalorder %s1664_s12, 1 }
   0xe   : > { %s1983_s19 = scalar_select %p1763_p5, 1, 0 }
   0xf   : > { %s1984_s20 = scalar_select %p1767_p6, 1, 0 }
  0x10   : > { %p259_p8 = scmp.lt.s32.totalorder %s1664_s12, 3  ;;  %p1974_p9 = scmp.eq.s32.totalorder %s1746_s13, 0 }
  0x11   : > { %s1666_s22 = smov [#allocation2]   ;;  %s1667_s25 = smov [#allocation5]  }
  0x12   : > { %p1774_p10 = pnand %p1189_p7, %p259_p8  ;;  %s277_s23 = sshll.u32 %s1666_s22, 4  ;;  %s278_s23 = int_to_ptr.vmem [resolvable:$true] %s277_s23 }
  0x13   : > { %s293_s26 = sshll.u32 %s1667_s25, 4  ;;  %s1538_s29 = scalar_lea.hbm %s1969_s5, 6144  ;;  %s1786_s26 = int_to_ptr.vmem [resolvable:$true] %s293_s26 }
  0x14   : > { %s1985_s21 = scalar_select %p1774_p10, 1, 0 }
  0x15   : > { %p1482_p11 = pneg %p1774_p10  ;;  %p1539_p13 = scmp.ne.s32.totalorder %s1969_s5, %s1538_s29 }
  0x16   : > { %p1545_p3 = scmp.lt.u32.totalorder %s1538_s29, %s1969_s5 }
  0x17   : > { %p1782_p12 = pnand %p1974_p9, %p1482_p11 }
  0x19   : > { %p1540_p0 = pneg %p1782_p12 }
  0x1b   : > { %p1541_p1 = pnand %p1540_p0, %p1539_p13 }
  0x1d   : > { %p1542_p2 = pneg %p1541_p1 }
  0x1f   : > { %p1547_p4 = pnand %p1545_p3, %p1542_p2 }
  0x21   : > { %1550 = shalt.err (!%p1547_p4)
}
  0x22   : > { %s1551_s25 = scalar_lea.vmem %s278_s23, 6144  ;;  %p1559_p9 = scmp.lt.s32.totalorder %s278_s23, %s278_s23 }
  0x23   : > { %p1552_p7 = scmp.ne.s32.totalorder %s278_s23, %s1551_s25  ;;  %p1560_p6 = scmp.lt.s32.totalorder %s1551_s25, %s1551_s25 }
  0x25   : > { %p1554_p8 = pnand %p1552_p7, %p1540_p0  ;;  %p1561_p5 = por %p1560_p6, %p1559_p9 }
  0x27   : > { %p1555_p11 = pneg %p1554_p8 }
  0x29   : > { %p1562_p10 = pnand %p1561_p5, %p1555_p11 }
  0x2b   : > { %1565 = shalt.err (!%p1562_p10)
}
  0x2c   : > { %s1668_s27 = smov 128   ;;  %s1669_s28 = smov 8  }
  0x2d   : > { %1485 = dma.hbm_to_vmem [thread:$0]  (!%p1782_p12), %s1969_s5, 6144, %s278_s23, [#allocation3], %s1668_s27, %s1668_s27, %s1669_s28  }
  0x2e   : > { %s1566_s22 = scalar_lea.hbm %s1971_s7, 2176 }
  0x2f   : > { %p1567_p13 = scmp.ne.s32.totalorder %s1971_s7, %s1566_s22  ;;  %p1573_p9 = scmp.lt.u32.totalorder %s1566_s22, %s1971_s7 }
  0x31   : > { %p1569_p5 = pnand %p1567_p13, %p1540_p0 }
  0x33   : > { %p1570_p6 = pneg %p1569_p5 }
  0x35   : > { %p1575_p10 = pnand %p1573_p9, %p1570_p6 }
  0x37   : > { %1578 = shalt.err (!%p1575_p10)
}
  0x38   : > { %s1579_s23 = scalar_lea.vmem %s1786_s26, 2176  ;;  %p1587_p4 = scmp.lt.s32.totalorder %s1786_s26, %s1786_s26 }
  0x39   : > { %p1580_p1 = scmp.ne.s32.totalorder %s1786_s26, %s1579_s23  ;;  %p1588_p7 = scmp.lt.s32.totalorder %s1579_s23, %s1579_s23 }
  0x3b   : > { %p1582_p2 = pnand %p1580_p1, %p1540_p0  ;;  %p1589_p8 = por %p1588_p7, %p1587_p4 }
  0x3d   : > { %p1583_p3 = pneg %p1582_p2 }
  0x3f   : > { %p1590_p11 = pnand %p1589_p8, %p1583_p3 }
  0x41   : > { %1593 = shalt.err (!%p1590_p11)
}
  0x42   : > { %1488 = dma.hbm_to_vmem [thread:$0]  (!%p1782_p12), %s1971_s7, 2176, %s1786_s26, [#allocation6], %s1668_s27, %s1668_s27, %s1669_s28  }
  0x43   : > { %p1987_p13 = scmp.ne.s32.totalorder %s1985_s21, 0 }
  0x44   : > { %p1988_p5 = scmp.eq.s32.totalorder (!%p1987_p13), %s1746_s13, 0 }
  0x45   : > { %334 = sbr.rel (%p1987_p13) target bundleno = 1545 (0x609), region = 56 }
  0x4c   : > { %1639 = dma.done.wait (%p1988_p5), [#allocation3], 6144   ;;  %p1989_p0 = pmov %p1988_p5 }
  0x4e   : > { %1641 = vsyncadd (%p1989_p0), [#allocation3], 4294961152  ;;  %p1990_p6 = pmov %p1989_p0 }
  0x4f   : > { %p1991_p9 = pmov %p1989_p0 }
  0x50   : > { %1643 = dma.done.wait (%p1990_p6), [#allocation6], 2176  }
  0x51   : > { %1645 = vsyncadd (%p1991_p9), [#allocation6], 4294965120  ;;  %p381_p10 = scmp.lt.s32.totalorder %s1746_s13, 1  ;;  %vm398_vm0 = vcmask 130048   ;;  %s1670_s16 = smov 8   ;;  %v592_v10 = vld [vmem:[%s1967_s3] sm:$0xff] }
  0x52   : > { %v593_v11 = vld [vmem:[%s1967_s3 + $0x8] sm:$0xff]  ;;  %v594_v13 = vld [vmem:[%s1967_s3 + $0x10] sm:$0xff]  ;;  %vm587_vm1 = vcmask 64512   ;;  %vm602_vm2 = vcmask 195584   ;;  %v787_v24 = vld [vmem:[#allocation2 + $0x80] sm:$0xff]  ;;  %s1215_s25 = sshll.u32 %s1746_s13, 4 }
  0x53   : > { %s1847_s18 = scalar_select %p381_p10, %s1746_s13, 1  ;;  %v1376_v12 = vpack.c.bf16 %v593_v11, %v592_v10  ;;  %v788_v25 = vld [vmem:[#allocation2 + $0x88] sm:$0xff]  ;;  %v771_v26 = vld [vmem:[#allocation2] sm:$0xff]  ;;  %v789_v29 = vld [vmem:[#allocation2 + $0x90] sm:$0xff] }
  0x54   : > { %v1384_v27 = vpack.c.bf16 %v788_v25, %v787_v24  ;;  %v772_v28 = vld [vmem:[#allocation2 + $0x8] sm:$0xff]  ;;  %v790_v30 = vld [vmem:[#allocation2 + $0x98] sm:$0xff]  ;;  %v773_v33 = vld [vmem:[#allocation2 + $0x10] sm:$0xff]  ;;  %s1922_s24 = scalar_lea.hbm %s1973_s9, %s1215_s25  ;;  %p1992_p1 = scmp.ne.s32.totalorder %s1983_s19, 0 }
  0x55   : > { %s1218_s21 = sshll.u32 %s1847_s18, 4  ;;  %v1386_v31 = vpack.c.bf16 %v772_v28, %v771_v26  ;;  %v1388_v32 = vpack.c.bf16 %v790_v30, %v789_v29  ;;  %v774_v34 = vld [vmem:[#allocation2 + $0x18] sm:$0xff]  ;;  %v791_v35 = vld [vmem:[#allocation2 + $0xa0] sm:$0xff]  ;;  %v792_v36 = vld [vmem:[#allocation2 + $0xa8] sm:$0xff]  ;;  %s393_s29 = scalar_lea.vmem %s1966_s2, %s1847_s18 }
  0x56   : > { %s385_s27 = scalar_lea.vmem %s1964_s0, %s1218_s21  ;;  %s390_s14 = scalar_lea.vmem %s1965_s1, %s1218_s21  ;;  %1385 = vmatprep.subr.bf16.mxu0 %v1384_v27  ;;  %v1390_v37 = vpack.c.bf16 %v774_v34, %v773_v33  ;;  %v1392_v38 = vpack.c.bf16 %v792_v36, %v791_v35  ;;  %v775_v39 = vld [vmem:[#allocation2 + $0x20] sm:$0xff]  ;;  %v776_v40 = vld [vmem:[#allocation2 + $0x28] sm:$0xff]  ;;  %v793_v41 = vld [vmem:[#allocation2 + $0xb0] sm:$0xff] }
  0x57   : > { %v394_v0 = vld [vmem:[%s385_s27] sm:$0xff]  ;;  %v1856_v1 = vld [vmem:[%s385_s27 + $0x8] sm:$0xff]  ;;  %s1671_s21 = smov 16   ;;  %1387 = vmatpush3.bf16.msra.mxu0 %v1386_v31  ;;  %v794_v42 = vld [vmem:[#allocation2 + $0xb8] sm:$0xff]  ;;  %v1394_v43 = vpack.c.bf16 %v776_v40, %v775_v39  ;;  %v1672_v40 = vmov 0.0|0.0   ;;  %s379_s18 = sand.u32 1, %s1656_s10  }
  0x58   : > { %v396_v2 = vld [vmem:[%s390_s14] sm:$0xff]  ;;  %v1368_v3 = vpack.c.bf16 %v1856_v1, %v394_v0  ;;  %1301 = vmatprep.mubr.msk.f32.mxu1 %vm398_vm0, %v394_v0  ;;  %v397_v4 = vld [vmem:[%s390_s14 + $0x8] sm:$0xff]  ;;  %1389 = vmatprep.subr.bf16.mxu0 %v1388_v32  ;;  %v1396_v44 = vpack.c.bf16 %v794_v42, %v793_v41  ;;  %v777_v45 = vld [vmem:[#allocation2 + $0x30] sm:$0xff]  ;;  %s380_s23 = scalar_lea.vmem [#allocation7], %s379_s18  ;;  %s1078_s26 = scalar_lea.sflag [#allocation4], %s379_s18 }
  0x59   : > { %v1372_v5 = vpack.c.bf16 %v397_v4, %v396_v2  ;;  %v778_v46 = vld [vmem:[#allocation2 + $0x38] sm:$0xff]  ;;  %v795_v47 = vld [vmem:[#allocation2 + $0xc0] sm:$0xff]  ;;  %v796_v48 = vld [vmem:[#allocation2 + $0xc8] sm:$0xff]  ;;  %s1090_s11 = sshll.u32 %s380_s23, 4  ;;  %s1674_s13 = smov [#allocation7]   ;;  %s1924_s11 = int_to_ptr.vmem [resolvable:$true] %s1090_s11 }
  0x5a   : > { %1369 = vmatprep.subr.bf16.mxu1 %v1368_v3  ;;  %v1398_v49 = vpack.c.bf16 %v778_v46, %v777_v45  ;;  %v1400_v50 = vpack.c.bf16 %v796_v48, %v795_v47  ;;  %v779_v51 = vld [vmem:[#allocation2 + $0x40] sm:$0xff]  ;;  %v780_v52 = vld [vmem:[#allocation2 + $0x48] sm:$0xff]  ;;  %v797_v53 = vld [vmem:[#allocation2 + $0xd0] sm:$0xff]  ;;  %s1594_s27 = scalar_lea.vmem %s1924_s11, 16  ;;  %s1598_s28 = sshll.u32 %s1674_s13, 4  ;;  %s1599_s28 = int_to_ptr.vmem [resolvable:$false] %s1598_s28 }
  0x5b   : > { %1371 = vmatpush3.bf16.msra.mxu1 %v1368_v3  ;;  %1391 = vmatpush3.bf16.msra.mxu0 %v1390_v37  ;;  %v798_v54 = vld [vmem:[#allocation2 + $0xd8] sm:$0xff]  ;;  %v1402_v55 = vpack.c.bf16 %v780_v52, %v779_v51  ;;  %v781_v57 = vld [vmem:[#allocation2 + $0x50] sm:$0xff]  ;;  %v799_v59 = vld [vmem:[#allocation2 + $0xe0] sm:$0xff]  ;;  %p1595_p12 = scmp.ne.s32.totalorder %s1924_s11, %s1594_s27  ;;  %p1601_p4 = scmp.lt.s32.totalorder %s1924_s11, %s1599_s28 }
  0x5c   : > { %1373 = vmatprep.subr.bf16.mxu1 %v1372_v5  ;;  %1393 = vmatprep.subr.bf16.mxu0 %v1392_v38  ;;  %v1404_v56 = vpack.c.bf16 %v798_v54, %v797_v53  ;;  %v782_v58 = vld [vmem:[#allocation2 + $0x58] sm:$0xff]  ;;  %v800_v60 = vld [vmem:[#allocation2 + $0xe8] sm:$0xff]  ;;  %v783_v63 = vld [vmem:[#allocation2 + $0x60] sm:$0xff] }
  0x5d   : > { %v1406_v61 = vpack.c.bf16 %v782_v58, %v781_v57  ;;  %v1408_v62 = vpack.c.bf16 %v800_v60, %v799_v59  ;;  %v802_v3 = vld [vmem:[#allocation2 + $0xf8] sm:$0xff]  ;;  %v809_v25 = vld [vmem:[#allocation2 + $0x130] sm:$0xff]  ;;  %v811_v28 = vld [vmem:[#allocation2 + $0x140] sm:$0xff]  ;;  %p1596_p2 = pnand %p1595_p12, %p1992_p1 }
  0x5e   : > { %1302 = vmatmul.mubr.msk.f32.vlgmr.msra.gmra.mrb[0].mxu1 %vm398_vm0, %v1856_v1  ;;  %v810_v26 = vld [vmem:[#allocation2 + $0x138] sm:$0xff]  ;;  %v812_v29 = vld [vmem:[#allocation2 + $0x148] sm:$0xff]  ;;  %v815_v32 = vld [vmem:[#allocation2 + $0x160] sm:$0xff] }
  0x5f   : > { %1375 = vmatpush3.bf16.msra.mxu1 %v1372_v5  ;;  %1308 = vmatprep.mubr.msk.f32.mxu1 %vm398_vm0, %v394_v0  ;;  %v1428_v27 = vpack.c.bf16 %v810_v26, %v809_v25  ;;  %v1432_v30 = vpack.c.bf16 %v812_v29, %v811_v28  ;;  %v814_v31 = vld [vmem:[#allocation2 + $0x158] sm:$0xff]  ;;  %v816_v33 = vld [vmem:[#allocation2 + $0x168] sm:$0xff]  ;;  %v817_v37 = vld [vmem:[#allocation2 + $0x170] sm:$0xff]  ;;  %p1597_p3 = pneg %p1596_p2 }
  0x60   : > { %1377 = vmatprep.subr.bf16.mxu1 %v1376_v12  ;;  %1395 = vmatpush3.bf16.msra.mxu0 %v1394_v43  ;;  %v1440_v34 = vpack.c.bf16 %v816_v33, %v815_v32  ;;  %v786_v35 = vld [vmem:[#allocation2 + $0x78] sm:$0xff]  ;;  %v985_v41 = vld [vmem:[#allocation5] sm:$0xff]  ;;  %v986_v42 = vld [vmem:[#allocation5 + $0x8] sm:$0xff] }
  0x61   : > { %1397 = vmatprep.subr.bf16.mxu0 %v1396_v44  ;;  %v818_v38 = vld [vmem:[#allocation2 + $0x178] sm:$0xff]  ;;  %v1449_v44 = vpack.c.bf16 %v986_v42, %v985_v41  ;;  %v987_v46 = vld [vmem:[#allocation5 + $0x10] sm:$0xff]  ;;  %v989_v51 = vld [vmem:[#allocation5 + $0x20] sm:$0xff] }
  0x62   : > { %1309 = vmatmul.mubr.msk.f32.vlgmr.msra.gmra.mrb[2].mxu1 %vm398_vm0, %v1856_v1  ;;  %v1444_v39 = vpack.c.bf16 %v818_v38, %v817_v37  ;;  %v988_v47 = vld [vmem:[#allocation5 + $0x18] sm:$0xff]  ;;  %v990_v52 = vld [vmem:[#allocation5 + $0x28] sm:$0xff]  ;;  %v991_v54 = vld [vmem:[#allocation5 + $0x30] sm:$0xff] }
  0x63   : > { %1379 = vmatpush3.bf16.msra.mxu1 %v1376_v12  ;;  %v1455_v53 = vpack.c.bf16 %v990_v52, %v989_v51  ;;  %v993_v57 = vld [vmem:[#allocation5 + $0x40] sm:$0xff]  ;;  %v994_v58 = vld [vmem:[#allocation5 + $0x48] sm:$0xff]  ;;  %v995_v60 = vld [vmem:[#allocation5 + $0x50] sm:$0xff] }
  0x64   : > { %1318 = vmatprep.subr.mxu1 %v594_v13  ;;  %1399 = vmatpush3.bf16.msra.mxu0 %v1398_v49  ;;  %v1452_v49 = vpack.c.bf16 %v988_v47, %v987_v46  ;;  %v1461_v59 = vpack.c.bf16 %v994_v58, %v993_v57 }
  0x65   : > { %1401 = vmatprep.subr.bf16.mxu0 %v1400_v50 }
  0x67   : > { %1319 = vmatpush3.msra.mxu1 %v594_v13 }
  0x68   : > { %1403 = vmatpush3.bf16.msra.mxu0 %v1402_v55  ;;  %v992_v55 = vld [vmem:[#allocation5 + $0x38] sm:$0xff] }
  0x69   : > { %1405 = vmatprep.subr.bf16.mxu0 %v1404_v56  ;;  %v1458_v56 = vpack.c.bf16 %v992_v55, %v991_v54 }
  0x6c   : > { %1407 = vmatpush3.bf16.msra.mxu0 %v1406_v61  ;;  %v996_v61 = vld [vmem:[#allocation5 + $0x58] sm:$0xff] }
  0x6d   : > { %1409 = vmatprep.subr.bf16.mxu0 %v1408_v62  ;;  %v1464_v62 = vpack.c.bf16 %v996_v61, %v995_v60 }
 0x131   : > { %v1865_v6 = vpop.f32.mrb[0].mxu1 }
 0x132   : > { %v1867_v7 = vpop.f32.mrb[1].mxu1 }
 0x133   : > { %1311 = vmatprep.mubr.msk.f32.mxu1 %vm398_vm0, %v1867_v7 }
 0x134   : > { %1312 = vmatmul.mubr.msk.f32.gmra.mrb[4].mxu1 %vm398_vm0, %v1865_v6 }
 0x135   : > { %v1310_v8 = vpop.f32.mrb[2].mxu1 }
 0x136   : > { %v552_v9 = vpop.f32.mrb[3].mxu1 }
 0x137   : > { %573 = vrot.lane.b32.xlu0 %v552_v9, %s1670_s16 }
 0x13b   : > { %575 = vrot.lane.b32.xlu0 %v1310_v8, %s1670_s16  ;;  %v1206_v8 = vld [vmem:[%s1968_s4] ss:$0 sm:$0xff] }
 0x1a9   : > { %v574_v16 = vpop.permute.xlu0 %573 }
 0x1aa   : > { %v588_v17 = vsel %vm587_vm1, %v396_v2, %v574_v16  ;;  %v801_v2 = vld [vmem:[#allocation2 + $0xf0] sm:$0xff] }
 0x1ab   : > { %v1412_v5 = vpack.c.bf16 %v802_v3, %v801_v2  ;;  %v999_v3 = vld [vmem:[#allocation5 + $0x70] sm:$0xff] }
 0x1ad   : > { %v576_v19 = vpop.permute.xlu0 %575 }
 0x1ae   : > { %v589_v21 = vsel %vm587_vm1, %v397_v4, %v576_v19  ;;  %v805_v19 = vld [vmem:[#allocation2 + $0x110] sm:$0xff] }
 0x207   : > { %v1313_v14 = vpop.f32.mrb[4].mxu1 }
 0x208   : > { %v562_v15 = vpop.f32.mrb[5].mxu1 }
 0x209   : > { %581 = vrot.lane.b32.xlu1 %v562_v15, %s1671_s21  ;;  %v804_v15 = vld [vmem:[#allocation2 + $0x108] sm:$0xff] }
 0x20d   : > { %583 = vrot.lane.b32.xlu1 %v1313_v14, %s1671_s21  ;;  %v803_v14 = vld [vmem:[#allocation2 + $0x100] sm:$0xff] }
 0x27b   : > { %v582_v18 = vpop.permute.xlu1 %581 }
 0x27c   : > { %v590_v20 = vsel %vm398_vm0, %v588_v17, %v582_v18  ;;  %v1416_v18 = vpack.c.bf16 %v804_v15, %v803_v14 }
 0x27d   : > { %1320 = vmatprep.mubr.msk.f32.mxu1 %vm602_vm2, %v590_v20  ;;  %v806_v20 = vld [vmem:[#allocation2 + $0x118] sm:$0xff] }
 0x27f   : > { %v584_v22 = vpop.permute.xlu1 %583 }
 0x280   : > { %v591_v23 = vsel %vm398_vm0, %v589_v21, %v584_v22  ;;  %v1420_v21 = vpack.c.bf16 %v806_v20, %v805_v19  ;;  %v807_v22 = vld [vmem:[#allocation2 + $0x120] sm:$0xff] }
 0x281   : > { %1321 = vmatmul.mubr.msk.f32.vlgmr.msra.gmra.mrb[6].mxu1 %vm602_vm2, %v591_v23  ;;  %v808_v23 = vld [vmem:[#allocation2 + $0x128] sm:$0xff] }
 0x282   : > { %1327 = vmatprep.mubr.msk.f32.mxu1 %vm398_vm0, %v394_v0  ;;  %v784_v0 = vld [vmem:[#allocation2 + $0x68] sm:$0xff]  ;;  %v1424_v24 = vpack.c.bf16 %v808_v23, %v807_v22 }
 0x283   : > { %v1410_v4 = vpack.c.bf16 %v784_v0, %v783_v63  ;;  %v997_v63 = vld [vmem:[#allocation5 + $0x60] sm:$0xff]  ;;  %v998_v0 = vld [vmem:[#allocation5 + $0x68] sm:$0xff] }
 0x284   : > { %v1467_v2 = vpack.c.bf16 %v998_v0, %v997_v63 }
 0x285   : > { %1411 = vmatpush3.bf16.msra.mxu0 %v1410_v4  ;;  %v1000_v4 = vld [vmem:[#allocation5 + $0x78] sm:$0xff] }
 0x286   : > { %1413 = vmatprep.subr.bf16.mxu0 %v1412_v5  ;;  %v1470_v5 = vpack.c.bf16 %v1000_v4, %v999_v3 }
 0x354   : > { %v1322_v9 = vpop.f32.mrb[6].mxu1 }
 0x355   : > { %v1890_v10 = vadd.f32 %v1322_v9, %v1206_v8  ;;  %v675_v11 = vpop.f32.mrb[7].mxu1  ;;  %v1001_v9 = vld [vmem:[#allocation5 + $0x80] sm:$0xff] }
 0x356   : > { %v1892_v12 = vadd.f32 %v1206_v8, %v675_v11  ;;  %v1673_v8 = vmov 0.0  }
 0x357   : > { %v685_v13 = vmax.f32 %v1890_v10, 0.0  ;;  %v984_v10 = vld [vmem:[%s393_s29] sm:$0x1]  ;;  %s1600_s29 = scalar_lea.vmem %s1599_s28, 32 }
 0x358   : > { %v684_v16 = vmax.f32 %v1892_v12, 0.0  ;;  %p1602_p7 = scmp.lt.s32.totalorder %s1600_s29, %s1594_s27 }
 0x35a   : > { %v1380_v17 = vpack.c.bf16 %v685_v13, %v684_v16  ;;  %p1603_p8 = por %p1602_p7, %p1601_p4 }
 0x35c   : > { %1381 = vmatprep.subr.bf16.mxu1 %v1380_v17  ;;  %p1604_p11 = pnand %p1603_p8, %p1597_p3 }
 0x35d   : > { %1383 = vmatpush3.bf16.msra.mxu1 %v1380_v17 }
 0x35e   : > { %1417 = vmatprep.subr.bf16.mxu1 %v1416_v18 }
 0x360   : > { %1328 = vmatmul.mubr.msk.f32.vlgmr.msra.gmra.mrb[8].mxu1 %vm398_vm0, %v1856_v1  ;;  %v813_v1 = vld [vmem:[#allocation2 + $0x150] sm:$0xff] }
 0x361   : > { %1330 = vmatprep.mubr.msk.f32.mxu1 %vm398_vm0, %v1867_v7  ;;  %1419 = vmatpush3.bf16.msra.mxu1 %v1416_v18  ;;  %v1436_v7 = vpack.c.bf16 %v814_v31, %v813_v1  ;;  %v1002_v31 = vld [vmem:[%s1972_s8] sm:$0x1] }
 0x362   : > { %1421 = vmatprep.subr.bf16.mxu1 %v1420_v21 }
 0x364   : > { %1331 = vmatmul.mubr.msk.f32.gmra.mrb[10].mxu1 %vm398_vm0, %v1865_v6  ;;  %v785_v6 = vld [vmem:[#allocation2 + $0x70] sm:$0xff] }
 0x365   : > { %1423 = vmatpush3.bf16.msra.mxu1 %v1420_v21  ;;  %v1414_v36 = vpack.c.bf16 %v786_v35, %v785_v6 }
 0x366   : > { %1425 = vmatprep.subr.bf16.mxu1 %v1424_v24 }
 0x367   : > { %1415 = vmatpush3.bf16.msra.mxu0 %v1414_v36 }
 0x368   : > { %1448 = vmatprep.subr.bf16.mxu0 %v1672_v40 }
 0x369   : > { %1427 = vmatpush3.bf16.msra.mxu1 %v1424_v24 }
 0x36a   : > { %1429 = vmatprep.subr.bf16.mxu1 %v1428_v27 }
 0x36d   : > { %1431 = vmatpush3.bf16.msra.mxu1 %v1428_v27 }
 0x36e   : > { %1433 = vmatprep.subr.bf16.mxu1 %v1432_v30 }
 0x371   : > { %1435 = vmatpush3.bf16.msra.mxu1 %v1432_v30 }
 0x372   : > { %1437 = vmatprep.subr.bf16.mxu1 %v1436_v7 }
 0x375   : > { %1439 = vmatpush3.bf16.msra.mxu1 %v1436_v7 }
 0x376   : > { %1441 = vmatprep.subr.bf16.mxu1 %v1440_v34 }
 0x379   : > { %1443 = vmatpush3.bf16.msra.mxu1 %v1440_v34 }
 0x37a   : > { %1445 = vmatprep.subr.bf16.mxu1 %v1444_v39 }
 0x37d   : > { %1447 = vmatpush3.bf16.msra.mxu1 %v1444_v39 }
 0x433   : > { %v1329_v43 = vpop.f32.mrb[8].mxu1 }
 0x434   : > { %v752_v45 = vpop.f32.mrb[9].mxu1 }
 0x435   : > { %890 = vmatprep.mubr.f32.mxu0 %v752_v45 }
 0x436   : > { %891 = vmatmul.mubr.f32.vlgmr.msra.gmra.mrb[0].mxu0 %v684_v16 }
 0x437   : > { %v1332_v48 = vpop.f32.mrb[10].mxu1  ;;  %895 = vmatprep.mubr.f32.mxu0 %v1329_v43  ;;  %1450 = vmatpush1.bf16.msra.mxu0 %v1449_v44 }
 0x438   : > { %v762_v50 = vpop.f32.mrb[11].mxu1  ;;  %1451 = vmatprep.subr.bf16.mxu0 %v1672_v40 }
 0x439   : > { %1365 = vmatprep.mubr.f32.mxu1 %v762_v50 }
 0x43a   : > { %896 = vmatmul.mubr.f32.gmra.mrb[2].mxu0 %v685_v13  ;;  %1366 = vmatmul.mubr.f32.vlgmr.msra.gmra.mrb[12].mxu1 %v1332_v48  ;;  %v1213_v13 = vld [vmem:[%s1970_s6] ss:$0 sm:$0xff] }
 0x43b   : > { %1453 = vmatpush1.bf16.msra.mxu0 %v1452_v49  ;;  %1214 = vmatprep.mubr.msk.f32.mxu0 %vm587_vm1, %v984_v10 }
 0x43c   : > { %1454 = vmatprep.subr.bf16.mxu0 %v1672_v40 }
 0x43f   : > { %1456 = vmatpush1.bf16.msra.mxu0 %v1455_v53 }
 0x440   : > { %1457 = vmatprep.subr.bf16.mxu0 %v1672_v40 }
 0x443   : > { %1459 = vmatpush1.bf16.msra.mxu0 %v1458_v56 }
 0x444   : > { %1460 = vmatprep.subr.bf16.mxu0 %v1672_v40 }
 0x447   : > { %1462 = vmatpush1.bf16.msra.mxu0 %v1461_v59 }
 0x448   : > { %1463 = vmatprep.subr.bf16.mxu0 %v1672_v40 }
 0x44b   : > { %1465 = vmatpush1.bf16.msra.mxu0 %v1464_v62 }
 0x44c   : > { %1466 = vmatprep.subr.bf16.mxu0 %v1672_v40 }
 0x44f   : > { %1468 = vmatpush1.bf16.msra.mxu0 %v1467_v2 }
 0x450   : > { %1469 = vmatprep.subr.bf16.mxu0 %v1672_v40 }
 0x453   : > { %1471 = vmatpush1.bf16.msra.mxu0 %v1470_v5 }
 0x454   : > { %1038 = vmatprep.subr.mxu0 %v1673_v8 }
 0x457   : > { %1039 = vmatpush1.msra.mxu0 %v1001_v9 }
 0x509   : > { %v1273_v11 = vpop.f32.mrb[0].mxu0 }
 0x50a   : > { %v1274_v12 = vpop.f32.mrb[1].mxu0 }
 0x50b   : > { %v1275_v14 = vadd.f32 %v1274_v12, %v1273_v11 }
 0x50d   : > { %v1276_v15 = vpop.f32.mrb[2].mxu0  ;;  %v1367_v16 = vpop.f32.mrb[12].mxu1  ;;  %v893_v17 = vadd.f32 %v1275_v14, %v1213_v13 }
 0x50e   : > { %v1277_v18 = vpop.f32.mrb[3].mxu0  ;;  %v967_v19 = vpop.f32.mrb[13].mxu1 }
 0x50f   : > { %v1278_v20 = vadd.f32 %v1277_v18, %v1276_v15  ;;  %v968_v21 = vadd.f32 %v967_v19, %v893_v17 }
 0x511   : > { %v898_v22 = vadd.f32 %v1278_v20, %v1213_v13 }
 0x513   : > { %v973_v23 = vadd.f32 %v1367_v16, %v898_v22 }
 0x515   : > { %v976_v24 = vadd.f32 %v973_v23, %v968_v21 }
 0x517   : > { %v977_v25 = vrot.slane %v976_v24, 4 }
 0x519   : > { %v978_v26 = vadd.f32 %v977_v25, %v976_v24 }
 0x51b   : > { %v979_v27 = vrot.slane %v978_v26, 2 }
 0x51d   : > { %v980_v28 = vadd.f32 %v979_v27, %v978_v26 }
 0x51f   : > { %v981_v29 = vrot.slane %v980_v28, 1 }
 0x521   : > { %v982_v30 = vadd.f32 %v981_v29, %v980_v28 }
 0x523   : > { %v983_v1 = vmul.f32 0.0625, %v982_v30 }
 0x525   : > { %1071 = vmatmul.mubr.f32.vlgmr.msra.gmra.mrb[4].mxu0 %v983_v1 }
 0x5f8   : > { %v1072_v7 = vpop.f32.mrb[4].mxu0 }
 0x5f9   : > { %v1073_v32 = vadd.f32 %v1072_v7, %v1002_v31  ;;  %v1074_v33 = vpop.f32.mrb[5].mxu0 }
 0x5fb   : > { %1076 = vst [vmem:[%s380_s23] sm:$0x1] %v1073_v32 }
 0x5fc   : > { %1607 = shalt.err (!%p1604_p11)
}
 0x5fd   : > { %s1608_s14 = scalar_lea.hbm %s1922_s24, 16  ;;  %s1612_s17 = scalar_lea.hbm %s1973_s9, 32 }
 0x5fe   : > { %p1609_p13 = scmp.ne.s32.totalorder %s1922_s24, %s1608_s14  ;;  %p1613_p6 = scmp.lt.u32.totalorder %s1922_s24, %s1973_s9 }
 0x5ff   : > { %p1614_p9 = scmp.lt.u32.totalorder %s1612_s17, %s1608_s14  ;;  %p1616_p12 = scmp.lt.u32.totalorder %s1608_s14, %s1922_s24 }
 0x600   : > { %p1610_p5 = pnand %p1609_p13, %p1992_p1 }
 0x601   : > { %p1615_p10 = por %p1614_p9, %p1613_p6 }
 0x602   : > { %p1611_p0 = pneg %p1610_p5 }
 0x603   : > { %p1617_p2 = por %p1616_p12, %p1615_p10 }
 0x605   : > { %p1618_p3 = pnand %p1617_p2, %p1611_p0 }
 0x607   : > { %1621 = shalt.err (!%p1618_p3)
}
 0x608   : > { %1480 = dma.vmem_to_hbm [thread:$0]  (%p1992_p1), %s1924_s11, 16, %s1922_s24, %s1078_s26  }
 0x609 PF: > { %p1497_p4 = scmp.ge.s32.totalorder %s1664_s12, 2  ;;  %s1102_s23 = sand.u32 1, %s1652_s30  }
 0x60a   : > { %p1993_p7 = scmp.ne.s32.totalorder %s1984_s20, 0  ;;  %s1103_s15 = scalar_lea.sflag [#allocation4], %s1102_s23 }
 0x60c   : > { %p1490_p8 = pnand %p1497_p4, %p1993_p7 }
 0x60e   : > { %1647 = dma.done.wait (!%p1490_p8), %s1103_s15, 16  }
 0x60f   : > { %1649 = vsyncadd (!%p1490_p8), %s1103_s15, 4294967280  ;;  %s1994_s12 = sld [smem:[#allocation12_spill]]  ;;  %s1995_s21 = sld [smem:[#allocation11_spill]] }
 0x610   : > { %s1996_s11 = sld [smem:[#allocation13_spill]]  ;;  %s1997_s30 = smov %s1656_s10 }
 0x615   : > { %p21_p11 = scmp.ge.s32.totalorder %s1994_s12, 4   ;;  %s1998_s10 = smov %s1995_s21 }
 0x617   :  { %23 = sbr.rel (!%p21_p11) target bundleno = 5 (0x5), region = 106 }
 0x61e   :  { %1107 = vsyncpa [#allocation3], 1 }
 0x61f   :  { %1109 = vsyncpa [#allocation3 + $0x1], 1 }
 0x620   :  { %1110 = vsyncpa [#allocation6], 1 }
 0x621   :  { %1111 = vsyncpa [#allocation4], 1 }
 0x622   :  { %1113 = vsyncpa [#allocation4 + $0x1], 1 }

</bundles_post_ra>
